<compile_context>
chip_gen: v7x
topology: tpu7x:2x2x1
jax: 0.10.0
libtpu: 0.0.40
codegen_flags: <defaults>
</compile_context>

<pallas_src>
import jax
import jax.numpy as jnp
from jax.experimental import pallas as pl
from jax.experimental.pallas import tpu as pltpu


def _cosine_loss_kernel(x_ref, tgt_ref, loss_ref):
    x = x_ref[...].astype(jnp.float32)              # [TB, C]
    tgt = tgt_ref[...]                              # [TB, 1] int32
    tb, c = x.shape

    col = jax.lax.broadcasted_iota(jnp.int32, (tb, c), 1)
    # gather(-1, target): select the target column, reduce over the lane axis.
    picked = jnp.sum(jnp.where(col == tgt, x, 0.0), axis=-1, keepdims=True)   # [TB, 1]
    # row L2 norm via sum of squares + rsqrt (rsqrt runs on the EUP slot).
    sumsq = jnp.sum(x * x, axis=-1, keepdims=True)                            # [TB, 1]
    loss_ref[...] = 1.0 - picked * jax.lax.rsqrt(sumsq)


def _round_up(n, m):
    return ((n + m - 1) // m) * m


def _vmem_limit_bytes():
    """Generation-aware scoped-VMEM limit (v7x: 64 MiB physical, v5e/v6e: 128 MiB)."""
    try:
        cap = pltpu.get_tpu_info().vmem_capacity_bytes
    except Exception:
        cap = 64 * 1024 * 1024   # conservative default: v7x per-TensorCore VMEM
    return int(min(cap * 3 // 4, 100 * 1024 * 1024))


def _pick_tile_rows(batch, channels, in_itemsize, vmem_budget_bytes):
    # Per tile row resident in VMEM:
    #   double-buffered input block      : 2 * C * itemsize
    #   in-kernel f32 working copies     : ~2 * C * 4
    #   target / output blocks           : negligible
    per_row = 2 * channels * in_itemsize + 2 * channels * 4 + 64
    tb = max(8, min(vmem_budget_bytes // per_row, 1024))
    tb = (tb // 8) * 8
    tb = min(tb, _round_up(batch, 8))
    return max(int(tb), 8)


def one_hot_cosine_loss(x, target, reduction='mean', *, tile_rows=None):
    if x.ndim != 2:
        raise ValueError("expected input of shape [batch, channels]")
    batch, channels = x.shape

    vmem_limit = _vmem_limit_bytes()
    if tile_rows is None:
        tile_rows = _pick_tile_rows(batch, channels, x.dtype.itemsize,
                                    (vmem_limit * 2) // 3)
    # TODO(synk): for very large C where even an (8, C) tile exceeds VMEM, add a
    # second ("arbitrary") grid axis over C with running sum-of-squares /
    # picked-value accumulators instead of the single-pass row reduction.

    b_pad = _round_up(batch, tile_rows)
    tgt2d = target.astype(jnp.int32).reshape(batch, 1)
    if b_pad != batch:
        # zero-padded rows produce NaN losses that are sliced off before reducing
        x = jnp.pad(x, ((0, b_pad - batch), (0, 0)))
        tgt2d = jnp.pad(tgt2d, ((0, b_pad - batch), (0, 0)))

    grid = (b_pad // tile_rows,)
    loss = pl.pallas_call(
        _cosine_loss_kernel,
        grid=grid,
        in_specs=[
            pl.BlockSpec((tile_rows, channels), lambda i: (i, 0)),
            pl.BlockSpec((tile_rows, 1), lambda i: (i, 0)),
        ],
        out_specs=pl.BlockSpec((tile_rows, 1), lambda i: (i, 0)),
        out_shape=jax.ShapeDtypeStruct((b_pad, 1), jnp.float32),
        compiler_params=pltpu.CompilerParams(
            dimension_semantics=("parallel",),
            vmem_limit_bytes=vmem_limit,
        ),
    )(x, tgt2d)

    loss = loss[:batch]          # drop padded rows before any reduction
    if reduction == 'mean':
        return loss.mean()
    elif reduction == 'sum':
        return loss.sum()
    elif reduction == 'none':
        return loss              # [B, 1], matching the PyTorch module
    else:
        raise RuntimeError(f'Unknown reduction: {reduction}')


if __name__ == "__main__":
    key = jax.random.PRNGKey(0)

    def ref_loss(x, target, reduction):
        xf = x.astype(jnp.float32)
        normed = xf / jnp.linalg.norm(xf, axis=-1, keepdims=True)
        loss = 1.0 - normed[jnp.arange(x.shape[0]), target][:, None]
        if reduction == 'mean':
            return loss.mean()
        if reduction == 'sum':
            return loss.sum()
        return loss

    # Case 1: small single-tile case (B=8, C=32).
    k1, k2, k3, k4 = jax.random.split(key, 4)
    B, C = 8, 32
    x = jax.random.normal(k1, (B, C), dtype=jnp.float32)
    tgt = jax.random.randint(k2, (B,), 0, C, dtype=jnp.int32)
    out = jax.block_until_ready(one_hot_cosine_loss(x, tgt, 'mean'))
    ref = ref_loss(x, tgt, 'mean')
    assert jnp.allclose(out, ref, atol=1e-5, rtol=1e-5), (out, ref)

    # Case 2: multi-tile grid (tile_rows=8 -> grid of 4, "parallel" batch axis).
    B, C = 32, 128
    x = jax.random.normal(k3, (B, C), dtype=jnp.float32)
    tgt = jax.random.randint(k4, (B,), 0, C, dtype=jnp.int32)
    for red in ('mean', 'sum', 'none'):
        out = jax.block_until_ready(one_hot_cosine_loss(x, tgt, red, tile_rows=8))
        ref = ref_loss(x, tgt, red)
        assert out.shape == ref.shape, (red, out.shape, ref.shape)
        assert jnp.allclose(out, ref, atol=1e-5, rtol=1e-5), (red, out, ref)

    # Case 3: batch not a multiple of the tile (padding path) + bf16 inputs.
    k5, k6 = jax.random.split(k1)
    B, C = 13, 64
    xb = jax.random.normal(k5, (B, C), dtype=jnp.float32).astype(jnp.bfloat16)
    tgtb = jax.random.randint(k6, (B,), 0, C, dtype=jnp.int32)
    out = jax.block_until_ready(one_hot_cosine_loss(xb, tgtb, 'mean', tile_rows=8))
    ref = ref_loss(xb, tgtb, 'mean')
    assert jnp.allclose(out, ref, atol=1e-3, rtol=1e-3), (out, ref)

    print("KERNEL_OK")
</pallas_src>

<mosaic_0001>
module attributes {stable_mosaic.version = 11 : i64} {
  func.func @_cosine_loss_kernel(%arg0: i32, %arg1: memref<8x32xf32, #tpu.memory_space<vmem>>, %arg2: memref<8x1xi32, #tpu.memory_space<vmem>>, %arg3: memref<8x1xf32, #tpu.memory_space<vmem>>) attributes {dimension_semantics = [#tpu.dimension_semantics<parallel>], iteration_bounds = array<i64: 1>, scalar_prefetch = 0 : i64, scratch_operands = 0 : i64, tpu.core_type = #tpu.core_type<tc>, window_params = [{transform_indices = @transform_0, window_bounds = array<i64: 8, 32>}, {transform_indices = @transform_1, window_bounds = array<i64: 8, 1>}, {transform_indices = @transform_2, window_bounds = array<i64: 8, 1>}]} {
    %c0 = arith.constant 0 : index
    %c0_0 = arith.constant 0 : index
    %0 = vector.load %arg1[%c0, %c0_0] : memref<8x32xf32, #tpu.memory_space<vmem>>, vector<8x32xf32>
    %c0_1 = arith.constant 0 : index
    %c0_2 = arith.constant 0 : index
    %1 = vector.load %arg2[%c0_1, %c0_2] : memref<8x1xi32, #tpu.memory_space<vmem>>, vector<8x1xi32>
    %2 = tpu.iota {dimensions = array<i32: 1>} : vector<8x32xi32>
    %3 = vector.broadcast %1 : vector<8x1xi32> to vector<8x32xi32>
    %4 = arith.cmpi eq, %2, %3 : vector<8x32xi32>
    %cst = arith.constant 0.000000e+00 : f32
    %5 = vector.broadcast %cst : f32 to vector<8x32xf32>
    %6 = arith.select %4, %0, %5 : vector<8x32xi1>, vector<8x32xf32>
    %cst_3 = arith.constant dense<0.000000e+00> : vector<8xf32>
    %7 = vector.multi_reduction <add>, %6, %cst_3 [1] : vector<8x32xf32> to vector<8xf32>
    %8 = vector.shape_cast %7 : vector<8xf32> to vector<8x1xf32>
    %9 = arith.mulf %0, %0 : vector<8x32xf32>
    %cst_4 = arith.constant dense<0.000000e+00> : vector<8xf32>
    %10 = vector.multi_reduction <add>, %9, %cst_4 [1] : vector<8x32xf32> to vector<8xf32>
    %11 = vector.shape_cast %10 : vector<8xf32> to vector<8x1xf32>
    %12 = math.rsqrt %11 : vector<8x1xf32>
    %13 = arith.mulf %8, %12 : vector<8x1xf32>
    %cst_5 = arith.constant 1.000000e+00 : f32
    %14 = vector.broadcast %cst_5 : f32 to vector<8x1xf32>
    %15 = arith.subf %14, %13 : vector<8x1xf32>
    %c0_6 = arith.constant 0 : index
    %c0_7 = arith.constant 0 : index
    %16 = vector.load %arg3[%c0_6, %c0_7] : memref<8x1xf32, #tpu.memory_space<vmem>>, vector<8x1xf32>
    tpu.vector_store %arg3[%c0_6, %c0_7], %15 {strides = array<i32>} : memref<8x1xf32, #tpu.memory_space<vmem>>, vector<8x1xf32>,
    return
  }
  func.func @transform_0(%arg0: i32) -> (i32, i32) {
    %c0_i32 = arith.constant 0 : i32
    %c0_i32_0 = arith.constant 0 : i32
    return %arg0, %c0_i32 : i32, i32
  }
  func.func @transform_1(%arg0: i32) -> (i32, i32) {
    %c0_i32 = arith.constant 0 : i32
    %c0_i32_0 = arith.constant 0 : i32
    return %arg0, %c0_i32 : i32, i32
  }
  func.func @transform_2(%arg0: i32) -> (i32, i32) {
    %c0_i32 = arith.constant 0 : i32
    %c0_i32_0 = arith.constant 0 : i32
    return %arg0, %c0_i32 : i32, i32
  }
}

</mosaic_0001>

<bundles_post_ra>
// kernel: tpu_custom_call.1
= control target key start
LH: loop header
LB: loop body
LE: loop exit
PB: predicated region body
PF: predicated region fallthrough
CT: control target
= control target key end

     0   :  { %v41_v0 = vmov 0   ;;  %vm20_vm0 = vcmask 261120   ;;  %v13_v5 = vlaneseq  ;;  %vm31_vm2 = vcmask 7168   ;;  %s66_s1 = inlined_call_operand.vmem [shape: s32[8,1], index: 1, kind: input, shape index: {}]   ;;  %s67_s0 = inlined_call_operand.vmem [shape: f32[8,32], index: 0, kind: input, shape index: {}]   ;;  %s68_s2 = inlined_call_operand.vmem [shape: f32[8,1], index: 2, kind: output, shape index: {}]  }
   0x1   :  { %38 = vset.pattern.permute.xlu0 %v41_v0  ;;  %v12_v1 = vld [vmem:[%s66_s1] sm:$0xff] }
   0x2   :  { %16 = vperm.xlu0 %38, %v12_v1   ;;  %v11_v2 = vld [vmem:[%s67_s0] sm:$0xff]  ;;  %v14_v6 = vand.u32 127, %v13_v5 }
   0x3   :  { %v24_v3 = vmul.f32 %v11_v2, %v11_v2 }
   0x5   :  { %v25_v4 = vsel %vm20_vm0, %v24_v3, 0.0 }
  0x21   :  { %26 = vadd.xlane.f32.xlu0 %v25_v4 }
  0x81   :  { %v17_v7 = vpop.permute.xlu0 %16 }
  0x82   :  { %vm18_vm1 = vcmp.eq.s32.totalorder %v14_v6, %v17_v7 }
  0x83   :  { %v19_v8 = vsel %vm18_vm1, %v11_v2, 0.0 }
  0x84   :  { %v21_v9 = vsel %vm20_vm0, %v19_v8, 0.0 }
  0x85   :  { %22 = vadd.xlane.f32.xlu1 %v21_v9 }
  0xae   :  { %v27_v10 = vpop.xlane.xlu0 %26 }
  0xaf   :  { %39 = vrsqrt.f32 %v27_v10 }
  0xb9   :  { %v40_v11 = vpop.eup %39 }
 0x112   :  { %v23_v12 = vpop.xlane.xlu1 %22 }
 0x113   :  { %v29_v13 = vmul.f32 %v40_v11, %v23_v12 }
 0x115   :  { %v30_v14 = vsub.f32 1.0, %v29_v13 }
 0x117   :  { %32 = vst.msk [vmem:[%s68_s2] sm:$0xff] %vm31_vm2, %v30_v14 }

</bundles_post_ra>
